<compile_context>
chip_gen: v5e
topology: v5e:2x2
jax: 0.10.0
libtpu: 0.0.40
codegen_flags: <defaults>
</compile_context>

<pallas_src>
import jax
import jax.numpy as jnp
from jax.experimental import pallas as pl
from jax.experimental.pallas import tpu as pltpu

BN_EPS = 1e-5
LEAKY_SLOPE = 0.2


def _round_up(x, m):
    return ((x + m - 1) // m) * m


def _lane(d):
    # Last-dim lane padding: a (rows, d) f32 block occupies rows * ceil(d/128)*128 words.
    return _round_up(d, 128)


def _vmem_budget_bytes():
    """Generation-aware VMEM budget (bytes) used for tiling and vmem_limit_bytes."""
    cap = 64 * 1024 * 1024  # conservative default (v7x per-TC VMEM)
    try:
        cap = int(pltpu.get_tpu_info().vmem_capacity_bytes)
    except Exception:
        pass
    cap = min(max(cap, 32 * 1024 * 1024), 128 * 1024 * 1024)
    return int(cap * 0.6)


def _choose_tm(M, Din, Dout, budget, max_rows_per_tile=None):
    """Largest multiple-of-8 row tile (<= cap) whose streaming footprint fits the budget."""
    cap = 2048 if max_rows_per_tile is None else max_rows_per_tile
    tm = max(8, min(_round_up(cap, 8), _round_up(M, 8)))

    def per_tile_bytes(t):
        return (2 * t * _lane(Din) * 4                      # x tile (f32), double buffered
                + 2 * t * _lane(Dout) * 4                   # y/out tile (f32), double buffered
                + 2 * _round_up(Din, 16) * _lane(Dout) * 2  # W (bf16)
                + 6 * 8 * _lane(Dout) * 4                   # small resident blocks / stats
                + 2 * t * _lane(Dout) * 4)                  # headroom for vector temps

    while tm > 8 and per_tile_bytes(tm) > budget:
        tm = max(8, _round_up(tm // 2, 8))
    return tm


def _fused_fits(M_pad, Din, Dout, tm, budget):
    resident_out = 2 * M_pad * _lane(Dout) * 4  # assume 2 output buffers (conservative)
    streaming = (2 * tm * _lane(Din) * 4
                 + 2 * _round_up(Din, 16) * _lane(Dout) * 2
                 + 3 * 8 * _lane(Dout) * 4
                 + 2 * tm * _lane(Dout) * 4)
    return resident_out + streaming <= budget


def fcblock_forward(x, w, b, gamma, beta, *, force_two_pass=False, max_rows_per_tile=None):
    """x: (B, S, Din) f32; w: (Din, Dout) (torch weight^T); returns (B, S, Dout) f32.

    `b` (Linear bias) is accepted for API parity but unused: with training-mode
    BatchNorm the bias only shifts the per-channel mean and cancels exactly.
    """
    del b
    B, S, Din = x.shape
    Dout = w.shape[1]
    M = B * S

    x2d = x.reshape(M, Din).astype(jnp.float32)       # cast to bf16 happens in-kernel
    w_bf = w.astype(jnp.bfloat16)
    gamma1 = gamma.reshape(1, Dout).astype(jnp.float32)
    beta1 = beta.reshape(1, Dout).astype(jnp.float32)

    budget = _vmem_budget_bytes()
    tm = _choose_tm(M, Din, Dout, budget, max_rows_per_tile)
    n_tiles = pl.cdiv(M, tm)
    M_pad = n_tiles * tm
    tail = M_pad != M
    inv_m = 1.0 / float(M)

    def cparams(sem):
        return pltpu.CompilerParams(dimension_semantics=sem, vmem_limit_bytes=budget)

    # ---------------- fused single-kernel path ----------------
    if (not force_two_pass) and _fused_fits(M_pad, Din, Dout, tm, budget):
        gb = jnp.concatenate([gamma1, beta1], axis=0)  # (2, Dout): row0=gamma, row1=beta

        def fused_kernel(x_ref, w_ref, gb_ref, o_ref, stats_ref):
            i = pl.program_id(0)

            @pl.when(i == 0)
            def _():
                stats_ref[...] = jnp.zeros_like(stats_ref)

            y = jnp.dot(x_ref[...].astype(jnp.bfloat16), w_ref[...],
                        preferred_element_type=jnp.float32)
            if tail:  # zero rows past M so they contribute nothing to the stats
                row = jax.lax.broadcasted_iota(jnp.int32, y.shape, 0)
                y = jnp.where(i * tm + row < M, y, 0.0)

            start = pl.multiple_of(i * tm, tm)
            o_ref[pl.ds(start, tm), :] = y                        # y stays in VMEM
            stats_ref[0:1, :] += jnp.sum(y, axis=0, keepdims=True)
            stats_ref[1:2, :] += jnp.sum(y * y, axis=0, keepdims=True)

            @pl.when(i == n_tiles - 1)
            def _():
                # Fold BN (biased variance, training mode) + affine into scale/shift.
                mean = stats_ref[0:1, :] * inv_m
                var = jnp.maximum(stats_ref[1:2, :] * inv_m - mean * mean, 0.0)
                scale = gb_ref[0:1, :] * jax.lax.rsqrt(var + BN_EPS)
                shift = gb_ref[1:2, :] - mean * scale

                def body(t, carry):
                    s0 = pl.multiple_of(t * tm, tm)
                    yt = o_ref[pl.ds(s0, tm), :]
                    out = yt * scale + shift
                    o_ref[pl.ds(s0, tm), :] = jnp.where(out >= 0.0, out, LEAKY_SLOPE * out)
                    return carry

                jax.lax.fori_loop(0, n_tiles, body, 0)

        out2d = pl.pallas_call(
            fused_kernel,
            out_shape=jax.ShapeDtypeStruct((M_pad, Dout), jnp.float32),
            grid_spec=pltpu.PrefetchScalarGridSpec(
                num_scalar_prefetch=0,
                grid=(n_tiles,),
                in_specs=[
                    pl.BlockSpec((tm, Din), lambda i: (i, 0)),     # streamed x tiles
                    pl.BlockSpec((Din, Dout), lambda i: (0, 0)),   # resident W
                    pl.BlockSpec((2, Dout), lambda i: (0, 0)),     # resident gamma/beta
                ],
                out_specs=pl.BlockSpec((M_pad, Dout), lambda i: (0, 0)),  # VMEM-resident y/out
                scratch_shapes=[pltpu.VMEM((2, Dout), jnp.float32)],      # sum / sumsq
            ),
            compiler_params=cparams(("arbitrary",)),
        )(x2d, w_bf, gb)

        if tail:
            out2d = out2d[:M]
        return out2d.reshape(B, S, Dout)

    # ---------------- two-pass fallback (very large M) ----------------
    n_split = 2                       # leading "parallel" axis -> both v7x TensorCores
    tpc = pl.cdiv(n_tiles, n_split)   # tiles per split

    def x_index(c, i):
        # Clamp so any overhang grid step re-reads a valid tile (never a fully
        # out-of-bounds block); its contribution is skipped inside the kernel.
        return (jnp.minimum(c * tpc + i, n_tiles - 1), 0)

    def stats_kernel(x_ref, w_ref, ps_ref):
        c = pl.program_id(0)
        i = pl.program_id(1)
        g = c * tpc + i

        @pl.when(i == 0)
        def _():
            ps_ref[...] = jnp.zeros_like(ps_ref)

        @pl.when(g < n_tiles)
        def _():
            y = jnp.dot(x_ref[...].astype(jnp.bfloat16), w_ref[...],
                        preferred_element_type=jnp.float32)
            if tail:
                row = jax.lax.broadcasted_iota(jnp.int32, y.shape, 0)
                y = jnp.where(g * tm + row < M, y, 0.0)
            ps_ref[0, 0:1, :] += jnp.sum(y, axis=0, keepdims=True)
            ps_ref[0, 1:2, :] += jnp.sum(y * y, axis=0, keepdims=True)

    partial_stats = pl.pallas_call(
        stats_kernel,
        out_shape=jax.ShapeDtypeStruct((n_split, 2, Dout), jnp.float32),
        grid_spec=pltpu.PrefetchScalarGridSpec(
            num_scalar_prefetch=0,
            grid=(n_split, tpc),
            in_specs=[
                pl.BlockSpec((tm, Din), x_index),
                pl.BlockSpec((Din, Dout), lambda c, i: (0, 0)),
            ],
            out_specs=pl.BlockSpec((1, 2, Dout), lambda c, i: (c, 0, 0)),  # per-split partials
        ),
        compiler_params=cparams(("parallel", "arbitrary")),
    )(x2d, w_bf)

    # Tiny XLA step: reduce the per-split partials and fold BN + affine.
    stats = partial_stats.sum(axis=0)                  # (2, Dout)
    mean = stats[0] * inv_m
    var = jnp.maximum(stats[1] * inv_m - mean * mean, 0.0)
    scale = gamma1[0] * jax.lax.rsqrt(var + BN_EPS)
    shift = beta1[0] - mean * scale
    scaleshift = jnp.stack([scale, shift], axis=0)     # (2, Dout)

    def apply_kernel(ss_ref, x_ref, w_ref, o_ref):
        # Recomputing the K=Din matmul costs fewer HBM bytes than a y round
        # trip whenever Din < Dout, and keeps full f32 precision.
        y = jnp.dot(x_ref[...].astype(jnp.bfloat16), w_ref[...],
                    preferred_element_type=jnp.float32)
        out = y * ss_ref[0:1, :] + ss_ref[1:2, :]
        o_ref[...] = jnp.where(out >= 0.0, out, LEAKY_SLOPE * out).astype(o_ref.dtype)

    out2d = pl.pallas_call(
        apply_kernel,
        out_shape=jax.ShapeDtypeStruct((M, Dout), jnp.float32),
        grid_spec=pltpu.PrefetchScalarGridSpec(
            num_scalar_prefetch=0,
            grid=(n_tiles,),
            in_specs=[
                pl.BlockSpec((2, Dout), lambda i: (0, 0)),     # resident scale/shift
                pl.BlockSpec((tm, Din), lambda i: (i, 0)),     # streamed x tiles
                pl.BlockSpec((Din, Dout), lambda i: (0, 0)),   # resident W
            ],
            out_specs=pl.BlockSpec((tm, Dout), lambda i: (i, 0)),
        ),
        compiler_params=cparams(("parallel",)),
    )(scaleshift, x2d, w_bf)

    return out2d.reshape(B, S, Dout)


def fcblock_reference(x, w, b, gamma, beta):
    """Pure-JAX reference mirroring the torch forward (training-mode BN).

    Uses the same bf16 matmul inputs as the kernel so the comparison is
    apples-to-apples; keeps the Linear bias to verify it cancels under BN.
    """
    y = jnp.einsum(
        "bsi,io->bso",
        x.astype(jnp.bfloat16),
        w.astype(jnp.bfloat16),
        preferred_element_type=jnp.float32,
    ) + b.reshape(-1)
    B, S, Dout = y.shape
    flat = y.reshape(B * S, Dout)
    mean = flat.mean(axis=0)
    var = ((flat - mean) ** 2).mean(axis=0)            # biased variance, as torch uses
    y_hat = (y - mean) / jnp.sqrt(var + BN_EPS)
    out = y_hat * gamma.reshape(-1) + beta.reshape(-1)
    return jnp.where(out >= 0.0, out, LEAKY_SLOPE * out)


def _make_params(key, Din, Dout):
    kw, kb, kg, kbt = jax.random.split(key, 4)
    bound = 1.0 / jnp.sqrt(jnp.float32(Din))
    w = jax.random.uniform(kw, (Din, Dout), jnp.float32, -bound, bound)      # weight^T
    b = jax.random.uniform(kb, (1, Dout), jnp.float32, -bound, bound)        # Linear bias
    gamma = 1.0 + 0.1 * jax.random.normal(kg, (1, Dout), dtype=jnp.float32)  # BN weight
    beta = 0.1 * jax.random.normal(kbt, (1, Dout), dtype=jnp.float32)        # BN bias
    return w, b, gamma, beta


if __name__ == "__main__":
    # TODO(synk): dropout branch omitted (module default dropout=None -> no-op);
    # BatchNorm running-stat buffer updates are not part of the forward output.
    key = jax.random.PRNGKey(0)
    kp, k1, k2 = jax.random.split(key, 3)

    Din, Dout = 32, 128
    w, b, gamma, beta = _make_params(kp, Din, Dout)

    fwd = jax.jit(fcblock_forward,
                  static_argnames=("force_two_pass", "max_rows_per_tile"))

    # Case 1: tiny shape -> fused single-kernel path, single tile.
    x1 = jax.random.normal(k1, (2, 8, Din), dtype=jnp.float32)
    out1 = fwd(x1, w, b, gamma, beta)
    jax.block_until_ready(out1)
    ref1 = fcblock_reference(x1, w, b, gamma, beta)
    assert out1.shape == (2, 8, Dout)
    assert jnp.allclose(out1, ref1, atol=5e-3, rtol=5e-3), "mismatch (fused, 1 tile)"

    # Case 2: larger M -> fused path, several tiles + tail row-mask.
    x2 = jax.random.normal(k2, (4, 300, Din), dtype=jnp.float32)   # M = 1200
    ref2 = fcblock_reference(x2, w, b, gamma, beta)
    out2 = fwd(x2, w, b, gamma, beta, max_rows_per_tile=256)
    jax.block_until_ready(out2)
    assert out2.shape == (4, 300, Dout)
    assert jnp.allclose(out2, ref2, atol=5e-3, rtol=5e-3), "mismatch (fused, tiled)"

    # Case 3: forced two-pass fallback (2-way split stats grid + recompute pass).
    out3 = fwd(x2, w, b, gamma, beta, force_two_pass=True, max_rows_per_tile=256)
    jax.block_until_ready(out3)
    assert jnp.allclose(out3, ref2, atol=5e-3, rtol=5e-3), "mismatch (two-pass, tiled)"

    # Case 4: forced fallback, single tile (exercises the clamped/deduped split
    # where one of the two parallel splits has no real work).
    out4 = fwd(x1, w, b, gamma, beta, force_two_pass=True)
    jax.block_until_ready(out4)
    assert jnp.allclose(out4, ref1, atol=5e-3, rtol=5e-3), "mismatch (two-pass, 1 tile)"

    print("KERNEL_OK")
</pallas_src>

<mosaic_0001>
module attributes {stable_mosaic.version = 11 : i64} {
  func.func @fused_kernel(%arg0: i32, %arg1: memref<16x32xf32, #tpu.memory_space<vmem>>, %arg2: memref<32x128xbf16, #tpu.memory_space<vmem>>, %arg3: memref<2x128xf32, #tpu.memory_space<vmem>>, %arg4: memref<16x128xf32, #tpu.memory_space<vmem>>, %arg5: memref<2x128xf32, #tpu.memory_space<vmem>>) attributes {dimension_semantics = [#tpu.dimension_semantics<arbitrary>], iteration_bounds = array<i64: 1>, scalar_prefetch = 0 : i64, scratch_operands = 1 : i64, tpu.core_type = #tpu.core_type<tc>, window_params = [{transform_indices = @transform_0, window_bounds = array<i64: 16, 32>}, {pipeline_mode = #tpu.pipeline_mode<synchronous>, transform_indices = @transform_1, window_bounds = array<i64: 32, 128>}, {pipeline_mode = #tpu.pipeline_mode<synchronous>, transform_indices = @transform_2, window_bounds = array<i64: 2, 128>}, {pipeline_mode = #tpu.pipeline_mode<synchronous>, transform_indices = @transform_3, window_bounds = array<i64: 16, 128>}]} {
    %c0_i32 = arith.constant 0 : i32
    %0 = arith.cmpi eq, %arg0, %c0_i32 : i32
    %1 = arith.extui %0 : i1 to i32
    %c0_i32_0 = arith.constant 0 : i32
    %2 = arith.cmpi ne, %1, %c0_i32_0 : i32
    scf.if %2 {
      %cst_16 = arith.constant 0.000000e+00 : f32
      %25 = vector.broadcast %cst_16 : f32 to vector<2x128xf32>
      %c0_17 = arith.constant 0 : index
      %c0_18 = arith.constant 0 : index
      %26 = vector.load %arg5[%c0_17, %c0_18] : memref<2x128xf32, #tpu.memory_space<vmem>>, vector<2x128xf32>
      tpu.vector_store %arg5[%c0_17, %c0_18], %25 {strides = array<i32>} : memref<2x128xf32, #tpu.memory_space<vmem>>, vector<2x128xf32>,
    } else {
    }
    %c0 = arith.constant 0 : index
    %c0_1 = arith.constant 0 : index
    %3 = vector.load %arg1[%c0, %c0_1] : memref<16x32xf32, #tpu.memory_space<vmem>>, vector<16x32xf32>
    %4 = arith.truncf %3 : vector<16x32xf32> to vector<16x32xbf16>
    %c0_2 = arith.constant 0 : index
    %c0_3 = arith.constant 0 : index
    %5 = vector.load %arg2[%c0_2, %c0_3] : memref<32x128xbf16, #tpu.memory_space<vmem>>, vector<32x128xbf16>
    %cst = arith.constant dense<0.000000e+00> : vector<16x128xf32>
    %6 = tpu.matmul %4, %5, %cst {dimension_numbers = #tpu.dot_dimension_numbers<[1], [0], [0], [1], [0, 0, 1, 1], [], []>} : vector<16x32xbf16>, vector<32x128xbf16>, vector<16x128xf32> -> vector<16x128xf32>
    %c16_i32 = arith.constant 16 : i32
    %7 = arith.muli %arg0, %c16_i32 : i32
    %8 = tpu.assume_multiple %7, 16 : i32
    %9 = arith.index_cast %8 : i32 to index
    %c0_4 = arith.constant 0 : index
    %10 = vector.load %arg4[%9, %c0_4] : memref<16x128xf32, #tpu.memory_space<vmem>>, vector<16x128xf32>
    tpu.vector_store %arg4[%9, %c0_4], %6 {strides = array<i32>} : memref<16x128xf32, #tpu.memory_space<vmem>>, vector<16x128xf32>,
    %c0_5 = arith.constant 0 : index
    %c0_6 = arith.constant 0 : index
    %11 = vector.load %arg5[%c0_5, %c0_6] : memref<2x128xf32, #tpu.memory_space<vmem>>, vector<1x128xf32>
    %cst_7 = arith.constant dense<0.000000e+00> : vector<128xf32>
    %12 = vector.multi_reduction <add>, %6, %cst_7 [0] : vector<16x128xf32> to vector<128xf32>
    %13 = vector.shape_cast %12 : vector<128xf32> to vector<1x128xf32>
    %14 = arith.addf %11, %13 : vector<1x128xf32>
    %c0_8 = arith.constant 0 : index
    %c0_9 = arith.constant 0 : index
    %15 = vector.load %arg5[%c0_8, %c0_9] : memref<2x128xf32, #tpu.memory_space<vmem>>, vector<1x128xf32>
    tpu.vector_store %arg5[%c0_8, %c0_9], %14 {strides = array<i32>} : memref<2x128xf32, #tpu.memory_space<vmem>>, vector<1x128xf32>,
    %c1 = arith.constant 1 : index
    %c0_10 = arith.constant 0 : index
    %16 = vector.load %arg5[%c1, %c0_10] : memref<2x128xf32, #tpu.memory_space<vmem>>, vector<1x128xf32>
    %17 = arith.mulf %6, %6 : vector<16x128xf32>
    %cst_11 = arith.constant dense<0.000000e+00> : vector<128xf32>
    %18 = vector.multi_reduction <add>, %17, %cst_11 [0] : vector<16x128xf32> to vector<128xf32>
    %19 = vector.shape_cast %18 : vector<128xf32> to vector<1x128xf32>
    %20 = arith.addf %16, %19 : vector<1x128xf32>
    %c1_12 = arith.constant 1 : index
    %c0_13 = arith.constant 0 : index
    %21 = vector.load %arg5[%c1_12, %c0_13] : memref<2x128xf32, #tpu.memory_space<vmem>>, vector<1x128xf32>
    tpu.vector_store %arg5[%c1_12, %c0_13], %20 {strides = array<i32>} : memref<2x128xf32, #tpu.memory_space<vmem>>, vector<1x128xf32>,
    %c0_i32_14 = arith.constant 0 : i32
    %22 = arith.cmpi eq, %arg0, %c0_i32_14 : i32
    %23 = arith.extui %22 : i1 to i32
    %c0_i32_15 = arith.constant 0 : i32
    %24 = arith.cmpi ne, %23, %c0_i32_15 : i32
    scf.if %24 {
      %c0_16 = arith.constant 0 : index
      %c0_17 = arith.constant 0 : index
      %25 = vector.load %arg5[%c0_16, %c0_17] : memref<2x128xf32, #tpu.memory_space<vmem>>, vector<1x128xf32>
      %cst_18 = arith.constant 6.250000e-02 : f32
      %26 = vector.broadcast %cst_18 : f32 to vector<1x128xf32>
      %27 = arith.mulf %25, %26 : vector<1x128xf32>
      %c1_19 = arith.constant 1 : index
      %c0_20 = arith.constant 0 : index
      %28 = vector.load %arg5[%c1_19, %c0_20] : memref<2x128xf32, #tpu.memory_space<vmem>>, vector<1x128xf32>
      %cst_21 = arith.constant 6.250000e-02 : f32
      %29 = vector.broadcast %cst_21 : f32 to vector<1x128xf32>
      %30 = arith.mulf %28, %29 : vector<1x128xf32>
      %31 = arith.mulf %27, %27 : vector<1x128xf32>
      %32 = arith.subf %30, %31 : vector<1x128xf32>
      %cst_22 = arith.constant 0.000000e+00 : f32
      %33 = vector.broadcast %cst_22 : f32 to vector<1x128xf32>
      %34 = arith.maximumf %32, %33 : vector<1x128xf32>
      %c0_23 = arith.constant 0 : index
      %c0_24 = arith.constant 0 : index
      %35 = vector.load %arg3[%c0_23, %c0_24] : memref<2x128xf32, #tpu.memory_space<vmem>>, vector<1x128xf32>
      %cst_25 = arith.constant 9.99999974E-6 : f32
      %36 = vector.broadcast %cst_25 : f32 to vector<1x128xf32>
      %37 = arith.addf %34, %36 : vector<1x128xf32>
      %38 = math.rsqrt %37 : vector<1x128xf32>
      %39 = arith.mulf %35, %38 : vector<1x128xf32>
      %c1_26 = arith.constant 1 : index
      %c0_27 = arith.constant 0 : index
      %40 = vector.load %arg3[%c1_26, %c0_27] : memref<2x128xf32, #tpu.memory_space<vmem>>, vector<1x128xf32>
      %41 = arith.mulf %27, %39 : vector<1x128xf32>
      %42 = arith.subf %40, %41 : vector<1x128xf32>
      %c0_i32_28 = arith.constant 0 : i32
      %c16_i32_29 = arith.constant 16 : i32
      %43 = arith.muli %c0_i32_28, %c16_i32_29 : i32
      %44 = tpu.assume_multiple %43, 16 : i32
      %45 = arith.index_cast %44 : i32 to index
      %c0_30 = arith.constant 0 : index
      %46 = vector.load %arg4[%45, %c0_30] : memref<16x128xf32, #tpu.memory_space<vmem>>, vector<16x128xf32>
      %47 = vector.broadcast %39 : vector<1x128xf32> to vector<16x128xf32>
      %48 = arith.mulf %46, %47 : vector<16x128xf32>
      %49 = vector.broadcast %42 : vector<1x128xf32> to vector<16x128xf32>
      %50 = arith.addf %48, %49 : vector<16x128xf32>
      %cst_31 = arith.constant 0.000000e+00 : f32
      %51 = vector.broadcast %cst_31 : f32 to vector<16x128xf32>
      %52 = arith.cmpf oge, %50, %51 : vector<16x128xf32>
      %cst_32 = arith.constant 2.000000e-01 : f32
      %53 = vector.broadcast %cst_32 : f32 to vector<16x128xf32>
      %54 = arith.mulf %53, %50 : vector<16x128xf32>
      %55 = arith.select %52, %50, %54 : vector<16x128xi1>, vector<16x128xf32>
      %56 = arith.index_cast %44 : i32 to index
      %c0_33 = arith.constant 0 : index
      %57 = vector.load %arg4[%56, %c0_33] : memref<16x128xf32, #tpu.memory_space<vmem>>, vector<16x128xf32>
      tpu.vector_store %arg4[%56, %c0_33], %55 {strides = array<i32>} : memref<16x128xf32, #tpu.memory_space<vmem>>, vector<16x128xf32>,
      %c1_i32 = arith.constant 1 : i32
    } else {
    }
    return
  }
  func.func @transform_0(%arg0: i32) -> (i32, i32) {
    %c0_i32 = arith.constant 0 : i32
    %c0_i32_0 = arith.constant 0 : i32
    return %arg0, %c0_i32 : i32, i32
  }
  func.func @transform_1(%arg0: i32) -> (i32, i32) {
    %c0_i32 = arith.constant 0 : i32
    %c0_i32_0 = arith.constant 0 : i32
    %c0_i32_1 = arith.constant 0 : i32
    return %c0_i32, %c0_i32_0 : i32, i32
  }
  func.func @transform_2(%arg0: i32) -> (i32, i32) {
    %c0_i32 = arith.constant 0 : i32
    %c0_i32_0 = arith.constant 0 : i32
    %c0_i32_1 = arith.constant 0 : i32
    return %c0_i32, %c0_i32_0 : i32, i32
  }
  func.func @transform_3(%arg0: i32) -> (i32, i32) {
    %c0_i32 = arith.constant 0 : i32
    %c0_i32_0 = arith.constant 0 : i32
    %c0_i32_1 = arith.constant 0 : i32
    return %c0_i32, %c0_i32_0 : i32, i32
  }
}

</mosaic_0001>

<bundles_post_ra>
// kernel: fcblock_forward.1
= control target key start
LH: loop header
LB: loop body
LE: loop exit
PB: predicated region body
PF: predicated region fallthrough
CT: control target
= control target key end

     0   :  { %s232_s0 = inlined_call_operand.vmem [shape: f32[16,32], index: 0, kind: input, shape index: {}]   ;;  %s233_s1 = inlined_call_operand.vmem [shape: bf16[32,128], index: 1, kind: input, shape index: {}]   ;;  %s234_s2 = inlined_call_operand.vmem [shape: f32[2,128], index: 2, kind: input, shape index: {}]   ;;  %s235_s3 = inlined_call_operand.hbm [shape: f32[16,128], index: 3, kind: output, shape index: {}]  }
   0x1   :  { %v154_v0 = vld [vmem:[%s233_s1 + $0x8] sm:$0xff] }
   0x2   :  { %8 = vsyncpa [#allocation4], 0  ;;  %50 = vmatpush.bf16.msra.mxu0 %v154_v0  ;;  %v153_v1 = vld [vmem:[%s233_s1] sm:$0xff]  ;;  %v22_v3 = vld [vmem:[%s232_s0 + $0x8] sm:$0xff]  ;;  %vm40_vm0 = vcmask 261120   ;;  %v187_v5 = vmov 0.0  }
   0x3   :  { %v21_v2 = vld [vmem:[%s232_s0] sm:$0xff]  ;;  %20 = vst [vmem:[#allocation2] sm:$0x3] %v187_v5  ;;  %s188_s22 = smov [#allocation3]   ;;  %s132_s26 = sshll.u32 %s235_s3, 4  ;;  %s133_s26 = int_to_ptr.hbm [resolvable:$true] %s132_s26 }
   0x4   :  { %v23_v4 = vpack.c.bf16 %v22_v3, %v21_v2  ;;  %v94_v41 = vld [vmem:[%s234_s2] sm:$0x1]  ;;  %v107_v45 = vld [vmem:[%s234_s2 + $0x1] sm:$0x1]  ;;  %s130_s23 = sshll.u32 %s188_s22, 4  ;;  %s189_s2 = smov 128   ;;  %s131_s23 = int_to_ptr.vmem [resolvable:$true] %s130_s23 }
   0x5   :  { %s190_s27 = smov 8  }
   0x6   :  { %51 = vmatpush.bf16.msra.mxu0 %v153_v1 }
   0x9   :  { %152 = vmatmul.msk.bf16.vlgmr.msra.gmra.mxu0 %vm40_vm0, %v23_v4 }
   0xa   :  { %v62_v21 = vld [vmem:[#allocation2] sm:$0x1]  ;;  %v72_v24 = vld [vmem:[#allocation2 + $0x1] sm:$0x1] }
  0x86   :  { %v53_v6 = vpop.f32.mrf.mxu0 }
  0x87   :  { %v73_v8 = vmul.f32 %v53_v6, %v53_v6 }
  0x8e   :  { %v55_v7 = vpop.f32.mrf.mxu0 }
  0x8f   :  { %v63_v9 = vadd.f32 %v55_v7, %v53_v6  ;;  %v74_v10 = vmul.f32 %v55_v7, %v55_v7 }
  0x91   :  { %v64_v11 = vrot.slane %v63_v9, 4  ;;  %v75_v12 = vadd.f32 %v74_v10, %v73_v8 }
  0x93   :  { %v65_v13 = vadd.f32 %v64_v11, %v63_v9  ;;  %v76_v14 = vrot.slane %v75_v12, 4 }
  0x95   :  { %v66_v15 = vrot.slane %v65_v13, 2  ;;  %v77_v16 = vadd.f32 %v76_v14, %v75_v12 }
  0x97   :  { %v67_v17 = vadd.f32 %v66_v15, %v65_v13  ;;  %v78_v18 = vrot.slane %v77_v16, 2 }
  0x99   :  { %v68_v19 = vrot.slane %v67_v17, 1  ;;  %v79_v20 = vadd.f32 %v78_v18, %v77_v16 }
  0x9b   :  { %v69_v22 = vadd.f32 %v68_v19, %v67_v17  ;;  %v80_v23 = vrot.slane %v79_v20, 1 }
  0x9d   :  { %v70_v25 = vadd.f32 %v69_v22, %v62_v21  ;;  %v81_v26 = vadd.f32 %v80_v23, %v79_v20 }
  0x9f   :  { %71 = vst [vmem:[#allocation2] sm:$0x1] %v70_v25  ;;  %v82_v27 = vadd.f32 %v81_v26, %v72_v24 }
  0xa1   :  { %83 = vst [vmem:[#allocation2 + $0x1] sm:$0x1] %v82_v27 }
  0xa6   :  { %v87_v28 = vld [vmem:[#allocation2] sm:$0x1] }
  0xa7   :  { %v88_v29 = vmul.f32 0.0625, %v87_v28 }
  0xa8   :  { %v89_v30 = vld [vmem:[#allocation2 + $0x1] sm:$0x1] }
  0xa9   :  { %v90_v31 = vmul.f32 0.0625, %v89_v30  ;;  %v91_v32 = vmul.f32 %v88_v29, %v88_v29 }
  0xab   :  { %v92_v33 = vsub.f32 %v90_v31, %v91_v32 }
  0xad   :  { %v93_v34 = vmax.f32 %v92_v33, 0.0 }
  0xaf   :  { %v95_v35 = vadd.f32 1e-05, %v93_v34 }
  0xb1   :  { %159 = vrsqrt.f32 %v95_v35  ;;  %vm102_vm2 = vweird.f32 %v95_v35 }
  0xb7   :  { %v160_v36 = vpop.eup %159 }
  0xb8   :  { %v97_v37 = vmul.f32 %v160_v36, %v95_v35  ;;  %vm103_vm1 = vweird.f32 %v160_v36 }
  0xb9   :  { %vm104_vm3 = vmor %vm102_vm2, %vm103_vm1 }
  0xba   :  { %v98_v38 = vmul.f32 %v160_v36, %v97_v37 }
  0xbc   :  { %v99_v39 = vmul.f32 0.5, %v98_v38 }
  0xbe   :  { %v100_v40 = vsub.f32 1.5, %v99_v39 }
  0xc0   :  { %v101_v42 = vmul.f32 %v160_v36, %v100_v40 }
  0xc2   :  { %v105_v43 = vsel %vm104_vm3, %v160_v36, %v101_v42 }
  0xc3   :  { %v106_v44 = vmul.f32 %v105_v43, %v94_v41 }
  0xc5   :  { %v108_v46 = vmul.f32 %v106_v44, %v88_v29  ;;  %v112_v47 = vperm.slane %v106_v44, 0 }
  0xc7   :  { %v109_v48 = vsub.f32 %v107_v45, %v108_v46  ;;  %v113_v49 = vmul.f32 %v112_v47, %v53_v6  ;;  %v114_v50 = vmul.f32 %v112_v47, %v55_v7 }
  0xc9   :  { %v115_v51 = vperm.slane %v109_v48, 0 }
  0xcb   :  { %v116_v52 = vadd.f32 %v115_v51, %v113_v49  ;;  %v117_v53 = vadd.f32 %v115_v51, %v114_v50 }
  0xcd   :  { %vm119_vm4 = vcmp.ge.f32.partialorder %v117_v53, 0.0  ;;  %v120_v54 = vmul.f32 0.2, %v116_v52  ;;  %v121_v55 = vmul.f32 0.2, %v117_v53  ;;  %vm118_vm5 = vcmp.ge.f32.partialorder %v116_v52, 0.0 }
  0xcf   :  { %v123_v56 = vsel %vm119_vm4, %v117_v53, %v121_v55  ;;  %v122_v57 = vsel %vm118_vm5, %v116_v52, %v120_v54 }
  0xd0   :  { %125 = vst [vmem:[#allocation3 + $0x8] sm:$0xff] %v123_v56 }
  0xd1   :  { %124 = vst [vmem:[#allocation3] sm:$0xff] %v122_v57 }
  0xd2   :  { %138 = dma.vmem_to_hbm [thread:$0]  %s131_s23, 256, %s133_s26, [#allocation4], %s189_s2, %s189_s2, %s190_s27  }
  0xd3   :  { %185 = dma.done.wait [#allocation4], 256  }
  0xd4   :  { %186 = vsyncadd [#allocation4], 4294967040 }
  0xd5   :  { %143 = vsyncpa [#allocation4], 1 }

</bundles_post_ra>
